<compile_context>
chip_gen: v7x
topology: tpu7x:2x2x1
jax: 0.10.0
libtpu: 0.0.40
codegen_flags: <defaults>
</compile_context>

<pallas_src>
import functools

import jax
import jax.numpy as jnp
from jax.experimental import pallas as pl
from jax.experimental.pallas import tpu as pltpu


def _ace_ce_kernel(bias_ref, logits_ref, labels_ref, out_ref, *, total_b, tb):
    """One batch tile: masked cross-entropy, emits a scalar partial sum."""
    i = pl.program_id(0)

    logits = logits_ref[...]          # (TB, C) native dtype (bf16 stays bf16)
    bias = bias_ref[...]              # (1, C)  native dtype: 0 allowed / ~-1e9 masked
    labels = labels_ref[...]          # (TB, 1) int32

    # Masking is a single native-width add; `masked` stays half-width for bf16.
    masked = logits + bias                                                  # (TB, C)

    # Row max over the allowed set (exact in native dtype; the label class is
    # always allowed so valid rows never see the -1e9 filler as their max).
    row_max = jnp.max(masked, axis=1, keepdims=True).astype(jnp.float32)    # (TB, 1)

    # f32 only inside the streamed exp/log chain.
    p = jnp.exp(masked.astype(jnp.float32) - row_max)                       # (TB, C)
    lse = jnp.log(jnp.sum(p, axis=1, keepdims=True)) + row_max              # (TB, 1)

    # Target term from the native-dtype masked tile (masked[label] == logits[label]).
    C = logits.shape[1]
    class_ids = jax.lax.broadcasted_iota(jnp.int32, (1, C), 1)              # (1, C)
    eq = class_ids == labels                                                # (TB, C)
    tgt = jnp.sum(jnp.where(eq, masked, 0), axis=1,
                  keepdims=True).astype(jnp.float32)                        # (TB, 1)

    per_row = lse - tgt                                                     # (TB, 1)

    # Zero out padded tail rows so the wrapper's sum / B is the exact mean.
    # TODO(synk): padded rows still flow garbage through exp before being
    # zeroed; harmless for the forward value, mask pre-exp if NaN-trapping or
    # a custom VJP is added later.
    row_ids = i * tb + jax.lax.broadcasted_iota(jnp.int32, (tb, 1), 0)
    per_row = jnp.where(row_ids < total_b, per_row, 0.0)

    out_ref[...] = jnp.sum(per_row, axis=0, keepdims=True).reshape(1, 1, 1)


def _vmem_capacity_bytes():
    try:
        return int(pltpu.get_tpu_info().vmem_capacity_bytes)
    except Exception:
        return 64 * 1024 * 1024   # conservative (v7x-sized) fallback


def _pick_batch_tile(B, C, itemsize, cap):
    # Target native logits tile ~ capacity/16: ~4 MiB on v7x (64 MiB VMEM),
    # ~8 MiB on v5e/v6e (128 MiB). No hard row cap; bytes decide.
    budget = max(1 << 20, cap // 16)
    tb = budget // max(1, C * itemsize)
    tb = max(8, (tb // 8) * 8)
    b_pad = ((B + 7) // 8) * 8
    # Keep >= 2 grid tiles whenever B allows it so the "parallel" batch axis can
    # be sharded across both TensorCores on v7x megacore.
    if b_pad > 8:
        half = ((((B + 1) // 2) + 7) // 8) * 8
        tb = min(tb, half)
    return min(tb, b_pad)


def _vmem_limit_bytes(tb, C, itemsize, cap):
    tile_native = tb * C * itemsize
    need = (2 * tile_native          # double-buffered logits input
            + tile_native            # native masked temp
            + 4 * tb * C * 4         # f32 exp-chain temporaries (generous)
            + (4 << 20))             # bias/labels/outputs/reductions headroom
    return int(min(0.9 * cap, max(need, 16 << 20)))


def ace_ce_loss(logits, labels, seen_max=-1, tb=None):
    """logits: [B, C] (f32 or bf16); labels: int[B]; seen_max: python int (-1 => seen empty)."""
    B, C = logits.shape
    labels_i32 = labels.astype(jnp.int32)
    labels_col = labels_i32.reshape(B, 1)

    # Allowed classes = labels.unique() U {c > seen_max} (when seen nonempty).
    # O(B + C) scatter instead of an O(B*C) compare+reduce.
    present = jnp.zeros((C,), jnp.int32).at[labels_i32].set(1, mode="drop") > 0
    if seen_max >= 0:
        allowed = jnp.logical_or(present, jnp.arange(C, dtype=jnp.int32) > seen_max)
    else:
        allowed = present
    # Additive mask bias in the logits dtype: 0 for allowed classes, -1e9 otherwise.
    bias = jnp.where(allowed, 0.0, -1.0e9).astype(logits.dtype).reshape(1, C)

    cap = _vmem_capacity_bytes()
    if tb is None:
        tb = _pick_batch_tile(B, C, logits.dtype.itemsize, cap)
    tb = max(8, (int(tb) // 8) * 8)
    num_tiles = pl.cdiv(B, tb)

    kernel = functools.partial(_ace_ce_kernel, total_b=B, tb=tb)
    partials = pl.pallas_call(
        kernel,
        out_shape=jax.ShapeDtypeStruct((num_tiles, 1, 1), jnp.float32),
        grid_spec=pltpu.PrefetchScalarGridSpec(
            num_scalar_prefetch=0,
            grid=(num_tiles,),
            in_specs=[
                pl.BlockSpec((1, C), lambda i: (0, 0)),      # additive bias row (replicated)
                pl.BlockSpec((tb, C), lambda i: (i, 0)),     # logits tile (native dtype)
                pl.BlockSpec((tb, 1), lambda i: (i, 0)),     # labels tile
            ],
            out_specs=pl.BlockSpec((1, 1, 1), lambda i: (i, 0, 0)),
        ),
        compiler_params=pltpu.CompilerParams(
            dimension_semantics=("parallel",),
            vmem_limit_bytes=_vmem_limit_bytes(tb, C, logits.dtype.itemsize, cap)),
        cost_estimate=pl.CostEstimate(
            flops=6 * B * C,
            transcendentals=B * C,
            bytes_accessed=(B * C * logits.dtype.itemsize
                            + C * logits.dtype.itemsize
                            + 4 * B + 4 * num_tiles)),
    )(bias, logits, labels_col)

    # Padded tail rows contribute exactly 0, so sum / B is the mean over real rows.
    return jnp.sum(partials) / B


def _ace_ce_loss_ref(logits, labels, seen_max=-1):
    """Pure-JAX reference mirroring the PyTorch forward."""
    B, C = logits.shape
    logits = logits.astype(jnp.float32)
    class_ids = jnp.arange(C)[None, :]
    eq = class_ids == labels[:, None]
    present = jnp.any(eq, axis=0, keepdims=True)
    above = jnp.logical_and(seen_max >= 0, class_ids > seen_max)
    masked = jnp.where(jnp.logical_or(present, above), logits, -1.0e9)
    lse = jax.nn.logsumexp(masked, axis=1)
    tgt = jnp.take_along_axis(masked, labels[:, None], axis=1)[:, 0]
    return jnp.mean(lse - tgt)


if __name__ == "__main__":
    key = jax.random.PRNGKey(0)
    k1, k2, k3, k4 = jax.random.split(key, 4)

    # Case 1: small batch, seen_so_far empty (matches __init__ state).
    B, C = 8, 32
    logits = jax.random.normal(k1, (B, C), dtype=jnp.float32)
    labels = jax.random.randint(k2, (B,), 0, C, dtype=jnp.int32)
    loss = ace_ce_loss(logits, labels, seen_max=-1)
    jax.block_until_ready(loss)
    ref = _ace_ce_loss_ref(logits, labels, seen_max=-1)
    assert jnp.allclose(loss, ref, atol=1e-5, rtol=1e-5), (loss, ref)

    # Case 2: multiple batch tiles + partial tail tile + non-empty seen_so_far.
    B2, C2 = 20, 40
    logits2 = jax.random.normal(k3, (B2, C2), dtype=jnp.float32)
    labels2 = jax.random.randint(k4, (B2,), 0, 10, dtype=jnp.int32)
    loss2 = ace_ce_loss(logits2, labels2, seen_max=9, tb=8)
    jax.block_until_ready(loss2)
    ref2 = _ace_ce_loss_ref(logits2, labels2, seen_max=9)
    assert jnp.allclose(loss2, ref2, atol=1e-5, rtol=1e-5), (loss2, ref2)

    # Case 3: bf16 logits stay narrow through the DMA; f32 only in the exp chain.
    logits_bf = logits.astype(jnp.bfloat16)
    loss3 = ace_ce_loss(logits_bf, labels, seen_max=-1)
    jax.block_until_ready(loss3)
    ref3 = _ace_ce_loss_ref(logits_bf, labels, seen_max=-1)
    assert jnp.allclose(loss3, ref3, atol=1e-4, rtol=1e-4), (loss3, ref3)

    print("KERNEL_OK")
</pallas_src>

<mosaic_0001>
module attributes {stable_mosaic.version = 11 : i64} {
  func.func @_ace_ce_kernel(%arg0: i32, %arg1: memref<1x32xf32, #tpu.memory_space<vmem>>, %arg2: memref<8x32xf32, #tpu.memory_space<vmem>>, %arg3: memref<8x1xi32, #tpu.memory_space<vmem>>, %arg4: memref<1x1x1xf32, #tpu.memory_space<vmem>>) attributes {dimension_semantics = [#tpu.dimension_semantics<parallel>], iteration_bounds = array<i64: 1>, scalar_prefetch = 0 : i64, scratch_operands = 0 : i64, tpu.core_type = #tpu.core_type<tc>, window_params = [{pipeline_mode = #tpu.pipeline_mode<synchronous>, transform_indices = @transform_0, window_bounds = array<i64: 1, 32>}, {transform_indices = @transform_1, window_bounds = array<i64: 8, 32>}, {transform_indices = @transform_2, window_bounds = array<i64: 8, 1>}, {transform_indices = @transform_3, window_bounds = array<i64: 1, 1, 1>}]} {
    %c0 = arith.constant 0 : index
    %c0_0 = arith.constant 0 : index
    %0 = vector.load %arg2[%c0, %c0_0] : memref<8x32xf32, #tpu.memory_space<vmem>>, vector<8x32xf32>
    %c0_1 = arith.constant 0 : index
    %c0_2 = arith.constant 0 : index
    %1 = vector.load %arg1[%c0_1, %c0_2] : memref<1x32xf32, #tpu.memory_space<vmem>>, vector<1x32xf32>
    %c0_3 = arith.constant 0 : index
    %c0_4 = arith.constant 0 : index
    %2 = vector.load %arg3[%c0_3, %c0_4] : memref<8x1xi32, #tpu.memory_space<vmem>>, vector<8x1xi32>
    %3 = vector.broadcast %1 : vector<1x32xf32> to vector<8x32xf32>
    %4 = arith.addf %0, %3 : vector<8x32xf32>
    %cst = arith.constant dense<0xFF800000> : vector<8xf32>
    %5 = vector.multi_reduction <maximumf>, %4, %cst [1] : vector<8x32xf32> to vector<8xf32>
    %6 = vector.shape_cast %5 : vector<8xf32> to vector<8x1xf32>
    %7 = vector.broadcast %6 : vector<8x1xf32> to vector<8x32xf32>
    %8 = arith.subf %4, %7 : vector<8x32xf32>
    %9 = math.exp %8 : vector<8x32xf32>
    %cst_5 = arith.constant dense<0.000000e+00> : vector<8xf32>
    %10 = vector.multi_reduction <add>, %9, %cst_5 [1] : vector<8x32xf32> to vector<8xf32>
    %11 = vector.shape_cast %10 : vector<8xf32> to vector<8x1xf32>
    %12 = math.log %11 : vector<8x1xf32>
    %13 = arith.addf %12, %6 : vector<8x1xf32>
    %14 = tpu.iota {dimensions = array<i32: 1>} : vector<1x32xi32>
    %15 = vector.broadcast %14 : vector<1x32xi32> to vector<8x32xi32>
    %16 = vector.broadcast %2 : vector<8x1xi32> to vector<8x32xi32>
    %17 = arith.cmpi eq, %15, %16 : vector<8x32xi32>
    %c0_i32 = arith.constant 0 : i32
    %18 = arith.sitofp %c0_i32 : i32 to f32
    %19 = vector.broadcast %18 : f32 to vector<8x32xf32>
    %20 = arith.select %17, %4, %19 : vector<8x32xi1>, vector<8x32xf32>
    %cst_6 = arith.constant dense<0.000000e+00> : vector<8xf32>
    %21 = vector.multi_reduction <add>, %20, %cst_6 [1] : vector<8x32xf32> to vector<8xf32>
    %22 = vector.shape_cast %21 : vector<8xf32> to vector<8x1xf32>
    %23 = arith.subf %13, %22 : vector<8x1xf32>
    %c8_i32 = arith.constant 8 : i32
    %24 = arith.muli %arg0, %c8_i32 : i32
    %25 = tpu.iota {dimensions = array<i32: 0>} : vector<8x1xi32>
    %26 = vector.broadcast %24 : i32 to vector<8x1xi32>
    %27 = arith.addi %26, %25 : vector<8x1xi32>
    %c8_i32_7 = arith.constant 8 : i32
    %28 = vector.broadcast %c8_i32_7 : i32 to vector<8x1xi32>
    %29 = arith.cmpi slt, %27, %28 : vector<8x1xi32>
    %cst_8 = arith.constant 0.000000e+00 : f32
    %30 = vector.broadcast %cst_8 : f32 to vector<8x1xf32>
    %31 = arith.select %29, %23, %30 : vector<8x1xi1>, vector<8x1xf32>
    %cst_9 = arith.constant dense<0.000000e+00> : vector<1xf32>
    %32 = vector.multi_reduction <add>, %31, %cst_9 [0] : vector<8x1xf32> to vector<1xf32>
    %33 = vector.shape_cast %32 : vector<1xf32> to vector<1x1xf32>
    %34 = vector.shape_cast %33 : vector<1x1xf32> to vector<1x1x1xf32>
    %c0_10 = arith.constant 0 : index
    %c0_11 = arith.constant 0 : index
    %c0_12 = arith.constant 0 : index
    %35 = vector.load %arg4[%c0_10, %c0_11, %c0_12] : memref<1x1x1xf32, #tpu.memory_space<vmem>>, vector<1x1x1xf32>
    tpu.vector_store %arg4[%c0_10, %c0_11, %c0_12], %34 {strides = array<i32>} : memref<1x1x1xf32, #tpu.memory_space<vmem>>, vector<1x1x1xf32>,
    return
  }
  func.func @transform_0(%arg0: i32) -> (i32, i32) {
    %c0_i32 = arith.constant 0 : i32
    %c0_i32_0 = arith.constant 0 : i32
    %c0_i32_1 = arith.constant 0 : i32
    return %c0_i32, %c0_i32_0 : i32, i32
  }
  func.func @transform_1(%arg0: i32) -> (i32, i32) {
    %c0_i32 = arith.constant 0 : i32
    %c0_i32_0 = arith.constant 0 : i32
    return %arg0, %c0_i32 : i32, i32
  }
  func.func @transform_2(%arg0: i32) -> (i32, i32) {
    %c0_i32 = arith.constant 0 : i32
    %c0_i32_0 = arith.constant 0 : i32
    return %arg0, %c0_i32 : i32, i32
  }
  func.func @transform_3(%arg0: i32) -> (i32, i32, i32) {
    %c0_i32 = arith.constant 0 : i32
    %c0_i32_0 = arith.constant 0 : i32
    %c0_i32_1 = arith.constant 0 : i32
    return %arg0, %c0_i32, %c0_i32_0 : i32, i32, i32
  }
}

</mosaic_0001>

<bundles_post_ra>
// kernel: tpu_custom_call.1
= control target key start
LH: loop header
LB: loop body
LE: loop exit
PB: predicated region body
PF: predicated region fallthrough
CT: control target
= control target key end

     0   :  { %vm25_vm0 = vcmask 261120   ;;  %v110_v3 = vmov 0   ;;  %s156_s0 = inlined_call_operand.vmem [shape: f32[1,32], index: 0, kind: input, shape index: {}]   ;;  %s157_s1 = inlined_call_operand.vmem [shape: f32[8,32], index: 1, kind: input, shape index: {}]   ;;  %s158_s2 = inlined_call_operand.vmem [shape: s32[8,1], index: 2, kind: input, shape index: {}]   ;;  %s159_s3 = inlined_call_operand.hbm [shape: f32[1,1,1], index: 3, kind: output, shape index: {}]  }
   0x1   :  { %v15_v0 = vld [vmem:[%s157_s1] sm:$0xff]  ;;  %81 = vset.pattern.permute.xlu0 %v110_v3 }
   0x2   :  { %v78_v1 = vld [vmem:[%s156_s0] ss:$0 sm:$0xff] }
   0x3   :  { %v24_v2 = vadd.f32 %v78_v1, %v15_v0 }
   0x4   :  { %8 = vsyncpa [#allocation3], 0  ;;  %v17_v5 = vld [vmem:[%s158_s2] sm:$0xff]  ;;  %v38_v9 = vlaneseq  ;;  %s111_s0 = smov [#allocation2]   ;;  %vm62_vm2 = vcmask 0  }
   0x5   :  { %v26_v4 = vsel %vm25_vm0, %v24_v2, -inf  ;;  %s70_s1 = sshll.u32 %s111_s0, 4  ;;  %s71_s1 = int_to_ptr.vmem [resolvable:$true] %s70_s1 }
   0x6   :  { %27 = vmax.xlane.f32.xlu0 %v26_v4  ;;  %v39_v10 = vand.u32 127, %v38_v9  ;;  %s86_s2 = scalar_lea.vmem %s71_s1, 16  ;;  %s90_s18 = scalar_lea.vmem %s71_s1, 32 }
   0x7   :  { %p87_p0 = scmp.ne.s32.totalorder %s71_s1, %s86_s2  ;;  %p91_p1 = scmp.lt.s32.totalorder %s71_s1, %s71_s1 }
   0x8   :  { %p92_p2 = scmp.lt.s32.totalorder %s90_s18, %s86_s2 }
   0xa   :  { %p93_p3 = por %p92_p2, %p91_p1 }
   0xc   :  { %p94_p4 = pnand %p93_p3, %p87_p0 }
  0x1c   :  { %41 = vperm.xlu0 %81, %v17_v5  }
  0x93   :  { %v28_v6 = vpop.xlane.xlu0 %27 }
  0x94   :  { %v29_v7 = vsub.f32 %v24_v2, %v28_v6 }
  0x96   :  { %v30_v8 = vmul.f32 1.442695, %v29_v7 }
  0x98   :  { %82 = vpow2.f32 %v30_v8 }
  0x9b   :  { %v42_v11 = vpop.permute.xlu0 %41 }
  0x9c   :  { %vm43_vm1 = vcmp.eq.s32.totalorder %v39_v10, %v42_v11 }
  0x9d   :  { %v44_v13 = vsel %vm43_vm1, %v24_v2, 0.0 }
  0x9e   :  { %v45_v15 = vsel %vm25_vm0, %v44_v13, 0.0 }
  0xa2   :  { %v83_v12 = vpop.eup %82 }
  0xa3   :  { %v32_v14 = vsel %vm25_vm0, %v83_v12, 0.0 }
  0xa4   :  { %33 = vadd.xlane.f32.xlu1 %v32_v14 }
  0xa8   :  { %46 = vadd.xlane.f32.xlu1 %v45_v15 }
 0x131   :  { %v34_v16 = vpop.xlane.xlu1 %33 }
 0x132   :  { %84 = vlog2.f32 %v34_v16 }
 0x135   :  { %v47_v19 = vpop.xlane.xlu1 %46 }
 0x13c   :  { %v85_v17 = vpop.eup %84 }
 0x13d   :  { %v36_v18 = vmul.f32 0.6931472, %v85_v17 }
 0x13f   :  { %v37_v20 = vadd.f32 %v36_v18, %v28_v6 }
 0x141   :  { %v48_v21 = vsub.f32 %v37_v20, %v47_v19 }
 0x143   :  { %v56_v22 = vrot.slane %v48_v21, 4 }
 0x145   :  { %v57_v23 = vadd.f32 %v56_v22, %v48_v21 }
 0x147   :  { %v58_v24 = vrot.slane %v57_v23, 2 }
 0x149   :  { %v59_v25 = vadd.f32 %v58_v24, %v57_v23 }
 0x14b   :  { %v60_v26 = vrot.slane %v59_v25, 1 }
 0x14d   :  { %v61_v27 = vadd.f32 %v60_v26, %v59_v25 }
 0x14f   :  { %63 = vst.msk [vmem:[#allocation2] sm:$0x1] %vm62_vm2, %v61_v27 }
 0x150   :  { %97 = shalt.err (!%p94_p4)
}
 0x151   :  { %s98_s21 = scalar_lea.hbm %s159_s3, 16 }
 0x152   :  { %p99_p5 = scmp.ne.s32.totalorder %s159_s3, %s98_s21  ;;  %p102_p6 = scmp.lt.u32.totalorder %s98_s21, %s159_s3 }
 0x154   :  { %p104_p7 = pnand %p102_p6, %p99_p5 }
 0x156   :  { %107 = shalt.err (!%p104_p7)
}
 0x157   :  { %73 = dma.vmem_to_hbm [thread:$0]  %s71_s1, 16, %s159_s3, [#allocation3]  }
 0x158   :  { %108 = dma.done.wait [#allocation3], 16  }
 0x159   :  { %109 = vsyncadd [#allocation3], 4294967280 }
 0x15a   :  { %77 = vsyncpa [#allocation3], 1 }

</bundles_post_ra>
